<compile_context>
chip_gen: v6e
topology: v6e:2x2x1
jax: 0.10.0
libtpu: 0.0.40
codegen_flags: <defaults>
</compile_context>

<pallas_src>
import functools

import jax
import jax.numpy as jnp
from jax.experimental import pallas as pl
from jax.experimental.pallas import tpu as pltpu


# ----------------------------------------------------------------------------
# Config (small synthetic sizes consistent with the module)
# ----------------------------------------------------------------------------
VOCAB_SIZE = 100
MAX_POS = 16
TYPE_VOCAB_SIZE = 2
MY_TYPE_VOCAB = 9
EMBED_SIZE = 32          # embedding_size
HIDDEN_SIZE = 64         # hidden_size != embedding_size -> embed_proj is used
LAYER_NORM_EPS = 1e-7
PAD_TOKEN_ID = 0

B, S = 2, 8

# Row-tile cap for large N.  Per-step VMEM is ~ row_tile*(5*4 + 64*4) bytes
# double-buffered plus the 32 KiB fused table, so 1024 rows is well under even
# v7x's 64 MiB VMEM (sweep to 2048-4096 on v6e/v5e with 128 MiB).  For the toy
# size the whole problem fits a single tile, so the grid collapses to one step
# (on v7x that means only one of the two TensorCores gets work; batch more
# sequences per call if that matters).
MAX_ROW_TILE = 1024

# Cast the fused table + multi-hot to bf16 for the MXU dot (2-4x throughput on
# v6e/v7x).  The multi-hot is exactly 0/1 so its cast is lossless; the table
# cast is not, and may exceed the 1e-4 parity tolerance -> off by default.
USE_BF16_MATMUL = False


def _round_up(x, m):
    return ((x + m - 1) // m) * m


# ----------------------------------------------------------------------------
# Pallas kernel: fused 4-way gather+sum+projection (one multi-hot MXU matmul)
# -> LayerNorm -> mask
# ----------------------------------------------------------------------------
def _emb_kernel(idsm_ref, table_ref, gb_ref, out_ref, *, eps):
    idsm = idsm_ref[...]                                 # (T, 5) int32
    ids = idsm[:, :4]                                    # 4 offset ids
    # Column 4 carries the float attention mask, bit-packed as int32.
    mask = pltpu.bitcast(idsm[:, 4:5], jnp.float32)      # (T, 1) f32

    t = ids.shape[0]
    v = table_ref.shape[0]

    # Multi-hot gather matrix.  The four id streams are offset into DISJOINT
    # row ranges of the packed table, so a bitwise OR of the four compares is
    # exact (3 ORs + 1 convert instead of 4 converts + 3 f32 adds).
    # NOTE: zero-padded tail rows hit row 0 (four coincident ids -> still 1
    # after OR); that is harmless only because packed row 0 is the word
    # padding row (all-zero) and padded rows are sliced off by the wrapper.
    cols = jax.lax.broadcasted_iota(jnp.int32, (t, v), 1)
    hit = ids[:, 0:1] == cols
    for j in range(1, 4):                                # static unroll (3)
        hit = hit | (ids[:, j:j + 1] == cols)
    mh = hit.astype(table_ref.dtype)

    # Fused gather + sum + embed_proj as a single MXU matmul:
    # (T, V) @ (V, H) where the table rows are already projected to H.
    y = jnp.dot(mh, table_ref[...], preferred_element_type=jnp.float32)

    # LayerNorm over last dim (biased variance, like torch.nn.LayerNorm).
    mean = jnp.mean(y, axis=-1, keepdims=True)
    c = y - mean
    var = jnp.mean(c * c, axis=-1, keepdims=True)
    ynorm = c * jax.lax.rsqrt(var + eps)                 # rsqrt -> EUP slot
    ynorm = ynorm * gb_ref[0:1, :] + gb_ref[1:2, :]      # gamma / beta

    # Attention-mask multiply (mask broadcast over hidden dim).
    out_ref[...] = ynorm * mask


def deberta_v2_embeddings_pallas(idsm, packed_proj, gamma_beta, *,
                                 row_tile, eps=LAYER_NORM_EPS):
    """idsm: (N_pad, 5) int32 (4 offset ids + bit-packed f32 mask);
    packed_proj: (V_pad, H) pre-projected fused table; gamma_beta: (2, H)."""
    n_pad = idsm.shape[0]
    v, h = packed_proj.shape
    grid = (n_pad // row_tile,)

    return pl.pallas_call(
        functools.partial(_emb_kernel, eps=eps),
        out_shape=jax.ShapeDtypeStruct((n_pad, h), jnp.float32),
        grid=grid,
        in_specs=[
            pl.BlockSpec((row_tile, 5), lambda i: (i, 0)),   # ids + mask bits
            pl.BlockSpec((v, h), lambda i: (0, 0)),          # fused table
            pl.BlockSpec((2, h), lambda i: (0, 0)),          # LN gamma/beta
        ],
        out_specs=pl.BlockSpec((row_tile, h), lambda i: (i, 0)),
        compiler_params=pltpu.CompilerParams(
            dimension_semantics=("parallel",)),
    )(idsm, packed_proj, gamma_beta)


# ----------------------------------------------------------------------------
# One-time (weight-only) constant preparation — hoisted out of the forward path
# ----------------------------------------------------------------------------
def prepare_embedding_constants(params, *, use_bf16=USE_BF16_MATMUL):
    word_t = params["word_embeddings"]             # (V, E)
    pos_t = params["position_embeddings"]          # (P, E)
    tok_t = params["token_type_embeddings"]        # (TT, E)
    my_t = params["my_token_type_embeddings"]      # (9, E)

    off_pos = word_t.shape[0]
    off_tok = off_pos + pos_t.shape[0]
    off_my = off_tok + tok_t.shape[0]
    total = off_my + my_t.shape[0]
    v_pad = _round_up(total, 8)
    e = word_t.shape[1]

    packed = jnp.zeros((v_pad, e), jnp.float32)
    packed = packed.at[:off_pos].set(word_t)
    packed = packed.at[off_pos:off_tok].set(pos_t)
    packed = packed.at[off_tok:off_my].set(tok_t)
    packed = packed.at[off_my:total].set(my_t)

    # Fold embed_proj (Linear, bias=False) into the table: gather-sum-then-
    # project == sum of projected rows (linearity), so this is exact.
    packed_proj = packed @ params["embed_proj_w"]        # (V_pad, H)
    if use_bf16:
        packed_proj = packed_proj.astype(jnp.bfloat16)

    gamma_beta = jnp.stack([params["ln_gamma"], params["ln_beta"]], axis=0)

    return {
        "packed_proj": jax.device_put(packed_proj),
        "gamma_beta": jax.device_put(gamma_beta),
        "offsets": (off_pos, off_tok, off_my),
        "hidden": params["embed_proj_w"].shape[1],
    }


# ----------------------------------------------------------------------------
# Module-equivalent forward (only per-call id packing here; no HBM emb slabs)
# ----------------------------------------------------------------------------
def deberta_v2_embeddings_forward(consts, input_ids, token_type, *,
                                  token_type_ids=None, position_ids=None,
                                  mask=None):
    b, s = input_ids.shape
    n = b * s
    off_pos, off_tok, off_my = consts["offsets"]
    h = consts["hidden"]

    if position_ids is None:
        position_ids = jnp.arange(s, dtype=jnp.int32)[None, :]
    position_ids = jnp.broadcast_to(position_ids.astype(jnp.int32), (b, s))
    if token_type_ids is None:
        token_type_ids = jnp.zeros((b, s), dtype=jnp.int32)
    if mask is None:
        mask = jnp.ones((b, s), dtype=jnp.float32)

    # Bit-pack the float mask as a 5th int32 column so ids+mask travel in one
    # lane-padded DMA per tile instead of two.
    mask_bits = jax.lax.bitcast_convert_type(
        mask.astype(jnp.float32), jnp.int32)
    idsm = jnp.stack(
        [input_ids.astype(jnp.int32),
         position_ids + off_pos,
         token_type_ids.astype(jnp.int32) + off_tok,
         token_type.astype(jnp.int32) + off_my,
         mask_bits],
        axis=-1).reshape(n, 5)

    # Tail handling: pad rows to a tile multiple, slice off after the kernel.
    row_tile = min(MAX_ROW_TILE, _round_up(n, 8))
    n_pad = _round_up(n, row_tile)
    if n_pad != n:
        idsm = jnp.pad(idsm, ((0, n_pad - n), (0, 0)))

    out = deberta_v2_embeddings_pallas(
        idsm, consts["packed_proj"], consts["gamma_beta"], row_tile=row_tile)
    return out[:n].reshape(b, s, h)


# ----------------------------------------------------------------------------
# Pure-JAX reference for verification.
# ----------------------------------------------------------------------------
def _reference(params, input_ids, token_type, mask):
    b, s = input_ids.shape
    position_ids = jnp.arange(s, dtype=jnp.int32)[None, :]
    token_type_ids = jnp.zeros((b, s), dtype=jnp.int32)
    emb = params["word_embeddings"][input_ids]
    emb = emb + params["position_embeddings"][position_ids]
    emb = emb + params["token_type_embeddings"][token_type_ids]
    emb = emb + params["my_token_type_embeddings"][token_type]
    emb = emb @ params["embed_proj_w"]
    mean = emb.mean(-1, keepdims=True)
    var = ((emb - mean) ** 2).mean(-1, keepdims=True)
    emb = (emb - mean) / jnp.sqrt(var + LAYER_NORM_EPS)
    emb = emb * params["ln_gamma"] + params["ln_beta"]
    emb = emb * mask[..., None].astype(emb.dtype)
    return emb


def init_params(key):
    ks = jax.random.split(key, 6)
    word = 0.02 * jax.random.normal(ks[0], (VOCAB_SIZE, EMBED_SIZE), jnp.float32)
    word = word.at[PAD_TOKEN_ID].set(0.0)   # padding_idx=0 -> zero row
    return {
        "word_embeddings": word,
        "position_embeddings": 0.02 * jax.random.normal(
            ks[1], (MAX_POS, EMBED_SIZE), jnp.float32),
        "token_type_embeddings": 0.02 * jax.random.normal(
            ks[2], (TYPE_VOCAB_SIZE, EMBED_SIZE), jnp.float32),
        "my_token_type_embeddings": 0.02 * jax.random.normal(
            ks[3], (MY_TYPE_VOCAB, EMBED_SIZE), jnp.float32),
        "embed_proj_w": 0.02 * jax.random.normal(
            ks[4], (EMBED_SIZE, HIDDEN_SIZE), jnp.float32),
        "ln_gamma": jnp.ones((HIDDEN_SIZE,), jnp.float32),
        "ln_beta": jnp.zeros((HIDDEN_SIZE,), jnp.float32),
    }


if __name__ == "__main__":
    key = jax.random.PRNGKey(0)
    pkey, k_ids, k_tt, k_mask = jax.random.split(key, 4)
    params = init_params(pkey)

    # Weight-only constants: computed once, outside the per-call forward path.
    consts = prepare_embedding_constants(params)

    input_ids = jax.random.randint(k_ids, (B, S), 1, VOCAB_SIZE, jnp.int32)
    token_type = jax.random.randint(k_tt, (B, S), 0, MY_TYPE_VOCAB, jnp.int32)
    mask = (jax.random.uniform(k_mask, (B, S)) > 0.2).astype(jnp.float32)

    out = deberta_v2_embeddings_forward(consts, input_ids, token_type, mask=mask)
    out = jax.block_until_ready(out)

    ref = _reference(params, input_ids, token_type, mask)
    if not jnp.allclose(out, ref, atol=1e-4, rtol=1e-4):
        err = float(jnp.max(jnp.abs(out - ref)))
        raise AssertionError(f"Pallas kernel output mismatch vs reference "
                             f"(max abs err {err})")

    print("KERNEL_OK")
</pallas_src>

<mosaic_0001>
module attributes {stable_mosaic.version = 11 : i64} {
  func.func @_emb_kernel(%arg0: i32, %arg1: memref<16x5xi32, #tpu.memory_space<vmem>>, %arg2: memref<128x64xf32, #tpu.memory_space<vmem>>, %arg3: memref<2x64xf32, #tpu.memory_space<vmem>>, %arg4: memref<16x64xf32, #tpu.memory_space<vmem>>) attributes {dimension_semantics = [#tpu.dimension_semantics<parallel>], iteration_bounds = array<i64: 1>, scalar_prefetch = 0 : i64, scratch_operands = 0 : i64, tpu.core_type = #tpu.core_type<tc>, window_params = [{transform_indices = @transform_0, window_bounds = array<i64: 16, 5>}, {pipeline_mode = #tpu.pipeline_mode<synchronous>, transform_indices = @transform_1, window_bounds = array<i64: 128, 64>}, {pipeline_mode = #tpu.pipeline_mode<synchronous>, transform_indices = @transform_2, window_bounds = array<i64: 2, 64>}, {transform_indices = @transform_3, window_bounds = array<i64: 16, 64>}]} {
    %c0 = arith.constant 0 : index
    %c0_0 = arith.constant 0 : index
    %0 = vector.load %arg1[%c0, %c0_0] : memref<16x5xi32, #tpu.memory_space<vmem>>, vector<16x5xi32>
    %1 = vector.extract_strided_slice %0 {offsets = [0, 0], sizes = [16, 4], strides = [1, 1]} : vector<16x5xi32> to vector<16x4xi32>
    %2 = vector.extract_strided_slice %0 {offsets = [0, 4], sizes = [16, 1], strides = [1, 1]} : vector<16x5xi32> to vector<16x1xi32>
    %3 = tpu.bitcast %2 : vector<16x1xi32> -> vector<16x1xf32>
    %4 = tpu.iota {dimensions = array<i32: 1>} : vector<16x128xi32>
    %5 = vector.extract_strided_slice %1 {offsets = [0, 0], sizes = [16, 1], strides = [1, 1]} : vector<16x4xi32> to vector<16x1xi32>
    %6 = vector.broadcast %5 : vector<16x1xi32> to vector<16x128xi32>
    %7 = arith.cmpi eq, %6, %4 : vector<16x128xi32>
    %8 = vector.extract_strided_slice %1 {offsets = [0, 1], sizes = [16, 1], strides = [1, 1]} : vector<16x4xi32> to vector<16x1xi32>
    %9 = vector.broadcast %8 : vector<16x1xi32> to vector<16x128xi32>
    %10 = arith.cmpi eq, %9, %4 : vector<16x128xi32>
    %11 = arith.ori %7, %10 : vector<16x128xi1>
    %12 = vector.extract_strided_slice %1 {offsets = [0, 2], sizes = [16, 1], strides = [1, 1]} : vector<16x4xi32> to vector<16x1xi32>
    %13 = vector.broadcast %12 : vector<16x1xi32> to vector<16x128xi32>
    %14 = arith.cmpi eq, %13, %4 : vector<16x128xi32>
    %15 = arith.ori %11, %14 : vector<16x128xi1>
    %16 = vector.extract_strided_slice %1 {offsets = [0, 3], sizes = [16, 1], strides = [1, 1]} : vector<16x4xi32> to vector<16x1xi32>
    %17 = vector.broadcast %16 : vector<16x1xi32> to vector<16x128xi32>
    %18 = arith.cmpi eq, %17, %4 : vector<16x128xi32>
    %19 = arith.ori %15, %18 : vector<16x128xi1>
    %20 = arith.extui %19 : vector<16x128xi1> to vector<16x128xi32>
    %21 = arith.sitofp %20 : vector<16x128xi32> to vector<16x128xf32>
    %c0_1 = arith.constant 0 : index
    %c0_2 = arith.constant 0 : index
    %22 = vector.load %arg2[%c0_1, %c0_2] : memref<128x64xf32, #tpu.memory_space<vmem>>, vector<128x64xf32>
    %cst = arith.constant dense<0.000000e+00> : vector<16x64xf32>
    %23 = tpu.matmul %21, %22, %cst {dimension_numbers = #tpu.dot_dimension_numbers<[1], [0], [0], [1], [0, 0, 1, 1], [], []>} : vector<16x128xf32>, vector<128x64xf32>, vector<16x64xf32> -> vector<16x64xf32>
    %cst_3 = arith.constant dense<0.000000e+00> : vector<16xf32>
    %24 = vector.multi_reduction <add>, %23, %cst_3 [1] : vector<16x64xf32> to vector<16xf32>
    %25 = vector.shape_cast %24 : vector<16xf32> to vector<16x1xf32>
    %cst_4 = arith.constant 6.400000e+01 : f32
    %26 = vector.broadcast %cst_4 : f32 to vector<16x1xf32>
    %27 = arith.divf %25, %26 : vector<16x1xf32>
    %28 = vector.broadcast %27 : vector<16x1xf32> to vector<16x64xf32>
    %29 = arith.subf %23, %28 : vector<16x64xf32>
    %30 = arith.mulf %29, %29 : vector<16x64xf32>
    %cst_5 = arith.constant dense<0.000000e+00> : vector<16xf32>
    %31 = vector.multi_reduction <add>, %30, %cst_5 [1] : vector<16x64xf32> to vector<16xf32>
    %32 = vector.shape_cast %31 : vector<16xf32> to vector<16x1xf32>
    %cst_6 = arith.constant 6.400000e+01 : f32
    %33 = vector.broadcast %cst_6 : f32 to vector<16x1xf32>
    %34 = arith.divf %32, %33 : vector<16x1xf32>
    %cst_7 = arith.constant 1.000000e-07 : f32
    %35 = vector.broadcast %cst_7 : f32 to vector<16x1xf32>
    %36 = arith.addf %34, %35 : vector<16x1xf32>
    %37 = math.rsqrt %36 : vector<16x1xf32>
    %38 = vector.broadcast %37 : vector<16x1xf32> to vector<16x64xf32>
    %39 = arith.mulf %29, %38 : vector<16x64xf32>
    %c0_8 = arith.constant 0 : index
    %c0_9 = arith.constant 0 : index
    %40 = vector.load %arg3[%c0_8, %c0_9] : memref<2x64xf32, #tpu.memory_space<vmem>>, vector<1x64xf32>
    %41 = vector.broadcast %40 : vector<1x64xf32> to vector<16x64xf32>
    %42 = arith.mulf %39, %41 : vector<16x64xf32>
    %c1 = arith.constant 1 : index
    %c0_10 = arith.constant 0 : index
    %43 = vector.load %arg3[%c1, %c0_10] : memref<2x64xf32, #tpu.memory_space<vmem>>, vector<1x64xf32>
    %44 = vector.broadcast %43 : vector<1x64xf32> to vector<16x64xf32>
    %45 = arith.addf %42, %44 : vector<16x64xf32>
    %46 = vector.broadcast %3 : vector<16x1xf32> to vector<16x64xf32>
    %47 = arith.mulf %45, %46 : vector<16x64xf32>
    %c0_11 = arith.constant 0 : index
    %c0_12 = arith.constant 0 : index
    %48 = vector.load %arg4[%c0_11, %c0_12] : memref<16x64xf32, #tpu.memory_space<vmem>>, vector<16x64xf32>
    tpu.vector_store %arg4[%c0_11, %c0_12], %47 {strides = array<i32>} : memref<16x64xf32, #tpu.memory_space<vmem>>, vector<16x64xf32>,
    return
  }
  func.func @transform_0(%arg0: i32) -> (i32, i32) {
    %c0_i32 = arith.constant 0 : i32
    %c0_i32_0 = arith.constant 0 : i32
    return %arg0, %c0_i32 : i32, i32
  }
  func.func @transform_1(%arg0: i32) -> (i32, i32) {
    %c0_i32 = arith.constant 0 : i32
    %c0_i32_0 = arith.constant 0 : i32
    %c0_i32_1 = arith.constant 0 : i32
    return %c0_i32, %c0_i32_0 : i32, i32
  }
  func.func @transform_2(%arg0: i32) -> (i32, i32) {
    %c0_i32 = arith.constant 0 : i32
    %c0_i32_0 = arith.constant 0 : i32
    %c0_i32_1 = arith.constant 0 : i32
    return %c0_i32, %c0_i32_0 : i32, i32
  }
  func.func @transform_3(%arg0: i32) -> (i32, i32) {
    %c0_i32 = arith.constant 0 : i32
    %c0_i32_0 = arith.constant 0 : i32
    return %arg0, %c0_i32 : i32, i32
  }
}

</mosaic_0001>

<bundles_post_ra>
// kernel: tpu_custom_call.1
= control target key start
LH: loop header
LB: loop body
LE: loop exit
PB: predicated region body
PF: predicated region fallthrough
CT: control target
= control target key end

     0   :  { %v325_v2 = vmov 0   ;;  %s437_s0 = inlined_call_operand.vmem [shape: s32[16,5], index: 0, kind: input, shape index: {}]   ;;  %s438_s1 = inlined_call_operand.vmem [shape: f32[128,64], index: 1, kind: input, shape index: {}]   ;;  %s439_s2 = inlined_call_operand.vmem [shape: f32[2,64], index: 2, kind: input, shape index: {}]   ;;  %s440_s3 = inlined_call_operand.hbm [shape: f32[16,64], index: 3, kind: output, shape index: {}]  }
   0x1   :  { %v357_v0 = vld [vmem:[%s437_s0 + $0x8] sm:$0xff]  ;;  %v362_v1 = vld [vmem:[%s437_s0] sm:$0xff]  ;;  %292 = vset.pattern.permute.xlu1 %v325_v2  ;;  %290 = vset.pattern.permute.xlu0 %v325_v2  ;;  %v76_v3 = vld [vmem:[%s438_s1 + $0x78] sm:$0xff] }
   0x2   :  { %23 = vperm.xlu1 %292, %v357_v0   ;;  %20 = vperm.xlu0 %290, %v362_v1   ;;  %v75_v4 = vld [vmem:[%s438_s1 + $0x70] sm:$0xff] }
   0x3   :  { %246 = vmatprep.subr.mxu0 %v76_v3 }
   0x4   :  { %247 = vmatpush3.msra.mxu0 %v76_v3 }
   0x5   :  { %8 = vsyncpa [#allocation3], 0  ;;  %248 = vmatprep.subr.mxu0 %v75_v4  ;;  %v326_v5 = vmov 1   ;;  %v74_v6 = vld [vmem:[%s438_s1 + $0x68] sm:$0xff]  ;;  %v73_v7 = vld [vmem:[%s438_s1 + $0x60] sm:$0xff]  ;;  %v327_v8 = vmov 2   ;;  %v17_v24 = vlaneseq }
   0x6   :  { %293 = vset.pattern.permute.xlu1 %v326_v5  ;;  %291 = vset.pattern.permute.xlu0 %v326_v5  ;;  %v72_v9 = vld [vmem:[%s438_s1 + $0x58] sm:$0xff]  ;;  %v71_v10 = vld [vmem:[%s438_s1 + $0x50] sm:$0xff]  ;;  %v328_v11 = vmov 3   ;;  %v70_v12 = vld [vmem:[%s438_s1 + $0x48] sm:$0xff]  ;;  %v329_v31 = vmov 1.0   ;;  %vm152_vm14 = vcmask 523264  }
   0x7   :  { %31 = vperm.xlu1 %293, %v357_v0   ;;  %28 = vperm.xlu0 %291, %v362_v1   ;;  %v69_v13 = vld [vmem:[%s438_s1 + $0x40] sm:$0xff]  ;;  %v68_v14 = vld [vmem:[%s438_s1 + $0x38] sm:$0xff]  ;;  %v67_v15 = vld [vmem:[%s438_s1 + $0x30] sm:$0xff]  ;;  %v18_v26 = vand.u32 127, %v17_v24  ;;  %v330_v37 = vmov 4   ;;  %s331_s22 = smov [#allocation2]  }
   0x8   :  { %249 = vmatpush3.msra.mxu0 %v75_v4  ;;  %v66_v16 = vld [vmem:[%s438_s1 + $0x28] sm:$0xff]  ;;  %v65_v17 = vld [vmem:[%s438_s1 + $0x20] sm:$0xff]  ;;  %v64_v18 = vld [vmem:[%s438_s1 + $0x18] sm:$0xff]  ;;  %s211_s23 = sshll.u32 %s331_s22, 4  ;;  %s212_s23 = int_to_ptr.vmem [resolvable:$true] %s211_s23 }
   0x9   :  { %250 = vmatprep.subr.mxu0 %v74_v6  ;;  %v63_v19 = vld [vmem:[%s438_s1 + $0x10] sm:$0xff]  ;;  %v62_v20 = vld [vmem:[%s438_s1 + $0x8] sm:$0xff]  ;;  %v61_v21 = vld [vmem:[%s438_s1] sm:$0xff]  ;;  %s303_s24 = scalar_lea.vmem %s212_s23, 256  ;;  %p308_p1 = scmp.lt.s32.totalorder %s212_s23, %s212_s23 }
   0xa   :  { %251 = vmatpush3.msra.mxu0 %v74_v6  ;;  %v226_v55 = vld [vmem:[%s439_s2] ss:$0 sm:$0xff]  ;;  %v227_v57 = vld [vmem:[%s439_s2 + $0x1] ss:$0 sm:$0xff]  ;;  %p304_p0 = scmp.ne.s32.totalorder %s212_s23, %s303_s24  ;;  %p309_p2 = scmp.lt.s32.totalorder %s303_s24, %s303_s24 }
   0xb   :  { %294 = vset.pattern.permute.xlu1 %v327_v8  ;;  %295 = vset.pattern.permute.xlu0 %v327_v8 }
   0xc   :  { %38 = vperm.xlu1 %294, %v362_v1   ;;  %41 = vperm.xlu0 %295, %v357_v0   ;;  %p310_p3 = por %p309_p2, %p308_p1 }
   0xd   :  { %252 = vmatprep.subr.mxu0 %v73_v7 }
   0xe   :  { %253 = vmatpush3.msra.mxu0 %v73_v7  ;;  %p311_p4 = pnand %p310_p3, %p304_p0 }
   0xf   :  { %254 = vmatprep.subr.mxu0 %v72_v9 }
  0x10   :  { %296 = vset.pattern.permute.xlu1 %v328_v11  ;;  %255 = vmatpush3.msra.mxu0 %v72_v9 }
  0x11   :  { %48 = vperm.xlu1 %296, %v362_v1   ;;  %256 = vmatprep.subr.mxu0 %v71_v10 }
  0x12   :  { %257 = vmatpush3.msra.mxu0 %v71_v10  ;;  %298 = vset.pattern.permute.xlu0 %v330_v37 }
  0x13   :  { %258 = vmatprep.subr.mxu0 %v70_v12 }
  0x14   :  { %259 = vmatpush3.msra.mxu0 %v70_v12 }
  0x15   :  { %51 = vperm.xlu1 %296, %v357_v0   ;;  %260 = vmatprep.subr.mxu0 %v69_v13 }
  0x16   :  { %261 = vmatpush3.msra.mxu0 %v69_v13 }
  0x17   :  { %262 = vmatprep.subr.mxu0 %v68_v14 }
  0x18   :  { %263 = vmatpush3.msra.mxu0 %v68_v14 }
  0x19   :  { %264 = vmatprep.subr.mxu0 %v67_v15  ;;  %297 = vset.pattern.permute.xlu1 %v330_v37 }
  0x1a   :  { %265 = vmatpush3.msra.mxu0 %v67_v15 }
  0x1b   :  { %266 = vmatprep.subr.mxu0 %v66_v16 }
  0x1c   :  { %267 = vmatpush3.msra.mxu0 %v66_v16 }
  0x1d   :  { %268 = vmatprep.subr.mxu0 %v65_v17 }
  0x1e   :  { %269 = vmatpush3.msra.mxu0 %v65_v17 }
  0x1f   :  { %270 = vmatprep.subr.mxu0 %v64_v18 }
  0x20   :  { %271 = vmatpush3.msra.mxu0 %v64_v18 }
  0x21   :  { %272 = vmatprep.subr.mxu0 %v63_v19 }
  0x22   :  { %273 = vmatpush3.msra.mxu0 %v63_v19 }
  0x23   :  { %274 = vmatprep.subr.mxu0 %v62_v20 }
  0x24   :  { %275 = vmatpush3.msra.mxu0 %v62_v20 }
  0x25   :  { %276 = vmatprep.subr.mxu0 %v61_v21 }
  0x26   :  { %277 = vmatpush3.msra.mxu0 %v61_v21 }
  0x7d   :  { %v24_v22 = vpop.permute.xlu1 %23  ;;  %v21_v23 = vpop.permute.xlu0 %20 }
  0x7e   :  { %vm25_vm0 = vcmp.eq.s32.totalorder %v21_v23, %v18_v26  ;;  %vm26_vm9 = vcmp.eq.s32.totalorder %v24_v22, %v18_v26 }
  0x82   :  { %v32_v25 = vpop.permute.xlu1 %31  ;;  %v29_v27 = vpop.permute.xlu0 %28 }
  0x83   :  { %vm33_vm1 = vcmp.eq.s32.totalorder %v29_v27, %v18_v26  ;;  %vm34_vm4 = vcmp.eq.s32.totalorder %v32_v25, %v18_v26 }
  0x84   :  { %vm35_vm2 = vmor %vm25_vm0, %vm33_vm1 }
  0x85   :  { %vm36_vm10 = vmor %vm26_vm9, %vm34_vm4 }
  0x87   :  { %v39_v28 = vpop.permute.xlu1 %38  ;;  %v42_v29 = vpop.permute.xlu0 %41 }
  0x88   :  { %vm43_vm3 = vcmp.eq.s32.totalorder %v39_v28, %v18_v26  ;;  %vm44_vm7 = vcmp.eq.s32.totalorder %v42_v29, %v18_v26 }
  0x89   :  { %vm45_vm6 = vmor %vm35_vm2, %vm43_vm3 }
  0x8a   :  { %vm46_vm11 = vmor %vm36_vm10, %vm44_vm7 }
  0x8c   :  { %v49_v30 = vpop.permute.xlu1 %48 }
  0x8d   :  { %vm53_vm5 = vcmp.eq.s32.totalorder %v49_v30, %v18_v26 }
  0x8e   :  { %vm55_vm8 = vmor %vm45_vm6, %vm53_vm5 }
  0x8f   :  { %278 = vmatprep.mubr.msk.f32.mxu0 %vm55_vm8, %v329_v31 }
  0x90   :  { %v52_v32 = vpop.permute.xlu1 %51 }
  0x91   :  { %vm54_vm12 = vcmp.eq.s32.totalorder %v52_v32, %v18_v26 }
  0x92   :  { %vm56_vm13 = vmor %vm46_vm11, %vm54_vm12 }
  0x93   :  { %279 = vmatmul.mubr.msk.f32.vlgmr.msra.gmra.mxu0 %vm56_vm13, %v329_v31 }
 0x153   :  { %v280_v33 = vpop.f32.mrf.mxu0 }
 0x154   :  { %v156_v34 = vsel %vm152_vm14, %v280_v33, 0.0 }
 0x155   :  { %157 = vadd.xlane.f32.xlu1 %v156_v34  ;;  %v143_v35 = vpop.f32.mrf.mxu0 }
 0x156   :  { %v153_v36 = vsel %vm152_vm14, %v143_v35, 0.0 }
 0x157   :  { %154 = vadd.xlane.f32.xlu0 %v153_v36 }
 0x166   :  { %195 = vperm.xlu1 %297, %v362_v1  }
 0x1de   :  { %v158_v38 = vpop.xlane.xlu1 %157 }
 0x1df   :  { %v161_v39 = vmul.f32 0.015625, %v158_v38 }
 0x1e0   :  { %v155_v40 = vpop.xlane.xlu0 %154 }
 0x1e1   :  { %v163_v41 = vsub.f32 %v280_v33, %v161_v39  ;;  %v160_v42 = vmul.f32 0.015625, %v155_v40 }
 0x1e2   :  { %v196_v1 = vpop.permute.xlu1 %195 }
 0x1e3   :  { %v162_v43 = vsub.f32 %v143_v35, %v160_v42  ;;  %v165_v44 = vmul.f32 %v163_v41, %v163_v41 }
 0x1e5   :  { %v169_v45 = vsel %vm152_vm14, %v165_v44, 0.0  ;;  %v164_v46 = vmul.f32 %v162_v43, %v162_v43 }
 0x1e6   :  { %170 = vadd.xlane.f32.xlu0 %v169_v45 }
 0x1e7   :  { %v166_v47 = vsel %vm152_vm14, %v164_v46, 0.0 }
 0x1ea   :  { %167 = vadd.xlane.f32.xlu0 %v166_v47 }
 0x200   :  { %199 = vperm.xlu0 %298, %v357_v0  }
 0x26f   :  { %v171_v48 = vpop.xlane.xlu0 %170 }
 0x270   :  { %v173_v49 = vmul.f32 0.015625, %v171_v48 }
 0x272   :  { %v175_v50 = vadd.f32 1e-07, %v173_v49 }
 0x273   :  { %v168_v51 = vpop.xlane.xlu0 %167 }
 0x274   :  { %299 = vrsqrt.f32 %v175_v50  ;;  %v172_v52 = vmul.f32 0.015625, %v168_v51 }
 0x276   :  { %v174_v53 = vadd.f32 1e-07, %v172_v52 }
 0x278   :  { %301 = vrsqrt.f32 %v174_v53 }
 0x27b   :  { %v200_v60 = vpop.permute.xlu0 %199 }
 0x281   :  { %v300_v54 = vpop.eup %299 }
 0x282   :  { %v179_v56 = vmul.f32 %v300_v54, %v163_v41 }
 0x284   :  { %v186_v58 = vmul.f32 %v226_v55, %v179_v56 }
 0x285   :  { %v302_v59 = vpop.eup %301 }
 0x286   :  { %v193_v61 = vadd.f32 %v227_v57, %v186_v58  ;;  %v178_v62 = vmul.f32 %v302_v59, %v162_v43 }
 0x288   :  { %v203_v63 = vmul.f32 %v200_v60, %v193_v61  ;;  %v185_v0 = vmul.f32 %v226_v55, %v178_v62 }
 0x28a   :  { %205 = vst.msk [vmem:[#allocation2 + $0x8] sm:$0xff] %vm152_vm14, %v203_v63  ;;  %v192_v2 = vadd.f32 %v227_v57, %v185_v0 }
 0x28c   :  { %v202_v3 = vmul.f32 %v196_v1, %v192_v2 }
 0x28e   :  { %204 = vst.msk [vmem:[#allocation2] sm:$0xff] %vm152_vm14, %v202_v3 }
 0x28f   :  { %314 = shalt.err (!%p311_p4)
}
 0x290   :  { %s332_s2 = smov 128   ;;  %s333_s25 = smov 8  }
 0x291   :  { %217 = dma.vmem_to_hbm [thread:$0]  %s212_s23, 256, %s440_s3, [#allocation3], %s332_s2, %s332_s2, %s333_s25  }
 0x292   :  { %323 = dma.done.wait [#allocation3], 256  }
 0x293   :  { %324 = vsyncadd [#allocation3], 4294967040 }
 0x294   :  { %221 = vsyncpa [#allocation3], 1 }

</bundles_post_ra>
